<compile_context>
chip_gen: v5e
topology: v5e:2x2
jax: 0.10.0
libtpu: 0.0.40
codegen_flags: <defaults>
</compile_context>

<pallas_src>
import functools

import jax
import jax.numpy as jnp
from jax.experimental import pallas as pl
from jax.experimental.pallas import tpu as pltpu


def _default_vmem_limit():
    # ~48 MiB on v7x (64 MiB physical VMEM), ~96 MiB on v5e/v6e (128 MiB).
    try:
        cap = int(pltpu.get_tpu_info().vmem_capacity_bytes)
    except Exception:
        cap = 128 * 1024 * 1024
    return min(100 * 1024 * 1024, (cap * 3) // 4)


VMEM_LIMIT = _default_vmem_limit()
_VMEM = pl.BlockSpec(memory_space=pltpu.MemorySpace.VMEM)

TILE_M = 512  # activation rows per tile for linear / LN kernels


def _pick_tile(total, want):
    want = min(want, total)
    if total % want == 0:
        return want
    for t in (512, 256, 128, 64, 32, 16, 8):
        if t <= want and total % t == 0:
            return t
    return total


# ----------------------------- Pallas kernels -----------------------------

def _embed_ln_kernel(w_ref, p_ref, t_ref, g_ref, b_ref, o_ref):
    # out = LayerNorm(word + pos + type) * gamma + beta  (f32 epilogue)
    x = (w_ref[...].astype(jnp.float32) + p_ref[...].astype(jnp.float32)
         + t_ref[...].astype(jnp.float32))
    mean = jnp.mean(x, axis=-1, keepdims=True)
    var = jnp.mean(jnp.square(x - mean), axis=-1, keepdims=True)
    y = (x - mean) * jax.lax.rsqrt(var + 1e-12) * g_ref[...] + b_ref[...]
    o_ref[...] = y.astype(o_ref.dtype)


def _linear_kernel(x_ref, w_ref, b_ref, o_ref, *, activation):
    # bf16 inputs, f32 MXU accumulation, f32 epilogue, bf16 store.
    y = jnp.dot(x_ref[...], w_ref[...], preferred_element_type=jnp.float32)
    y = y + b_ref[...]
    if activation == "gelu":
        # TODO(synk): HF BERT default is exact erf-GELU; tanh approximation here.
        c = jnp.float32(0.7978845608028654)  # sqrt(2/pi)
        y = 0.5 * y * (1.0 + jnp.tanh(c * (y + 0.044715 * y * y * y)))
    o_ref[...] = y.astype(o_ref.dtype)


def _linear_residual_ln_kernel(x_ref, w_ref, b_ref, res_ref, g_ref, bb_ref,
                               o_ref):
    # out = LayerNorm(x @ w + b + res) * gamma + beta   (f32 epilogue)
    y = jnp.dot(x_ref[...], w_ref[...], preferred_element_type=jnp.float32)
    y = y + b_ref[...] + res_ref[...].astype(jnp.float32)
    mean = jnp.mean(y, axis=-1, keepdims=True)
    var = jnp.mean(jnp.square(y - mean), axis=-1, keepdims=True)
    out = (y - mean) * jax.lax.rsqrt(var + 1e-12) * g_ref[...] + bb_ref[...]
    o_ref[...] = out.astype(o_ref.dtype)


def _attention_kernel(qkv_ref, mask_ref, o_ref, *, num_heads, scale):
    # qkv block: (1, S, 3H) bf16 (no JAX head transpose); mask: (1, 1, S) f32.
    x = qkv_ref[0]                       # (S, 3H)
    hidden = x.shape[-1] // 3
    dh = hidden // num_heads
    q = x[:, 0 * hidden:1 * hidden]      # (S, H) -- 128-aligned lane slices
    k = x[:, 1 * hidden:2 * hidden]
    v = x[:, 2 * hidden:3 * hidden]
    mask = mask_ref[0]                   # (1, S) additive f32

    # Unrolled per-head loop: scores stay (S, S) f32 per head (VMEM-friendly),
    # output is assembled into a single lane-dense (S, 768) slab.
    # TODO(synk): for long sequences, switch to flash-style kv-block tiling
    # with an online-softmax accumulator (kv grid axis + VMEM scratch).
    outs = []
    for h in range(num_heads):
        sl = slice(h * dh, (h + 1) * dh)
        qh, kh, vh = q[:, sl], k[:, sl], v[:, sl]
        s = jnp.einsum("qd,kd->qk", qh, kh,
                       preferred_element_type=jnp.float32) * scale
        s = s + mask                     # broadcast over query rows
        m = jnp.max(s, axis=-1, keepdims=True)
        p = jnp.exp(s - m)
        inv = pl.reciprocal(jnp.sum(p, axis=-1, keepdims=True), approx=True)
        p = (p * inv).astype(vh.dtype)
        outs.append(jnp.dot(p, vh, preferred_element_type=jnp.float32))
    o = jnp.concatenate(outs, axis=-1)   # (S, H) merged-head, lane-dense
    o_ref[...] = o[None].astype(o_ref.dtype)


def _pooler_classifier_kernel(cls_ref, wp_ref, bp_ref, wo_ref, bo_ref, o_ref):
    pooled = jnp.dot(cls_ref[...], wp_ref[...],
                     preferred_element_type=jnp.float32)
    pooled = jnp.tanh(pooled + bp_ref[...])
    # dropout(p=0.1) is identity at inference; classifier matmul kept in f32.
    logits = jnp.dot(pooled, wo_ref[...].astype(jnp.float32),
                     preferred_element_type=jnp.float32) + bo_ref[...]
    o_ref[...] = logits


# ----------------------------- thin wrappers -----------------------------

def embed_layernorm(word, pos, tok, gamma, beta):
    """word/tok: (B, S, H); pos: (1, S, H). Fused add + LayerNorm, grid over B."""
    b, s, h = word.shape
    return pl.pallas_call(
        _embed_ln_kernel,
        out_shape=jax.ShapeDtypeStruct((b, s, h), jnp.bfloat16),
        grid=(b,),
        in_specs=[
            pl.BlockSpec((1, s, h), lambda i: (i, 0, 0)),
            pl.BlockSpec((1, s, h), lambda i: (0, 0, 0)),
            pl.BlockSpec((1, s, h), lambda i: (i, 0, 0)),
            pl.BlockSpec((1, h), lambda i: (0, 0)),
            pl.BlockSpec((1, h), lambda i: (0, 0)),
        ],
        out_specs=pl.BlockSpec((1, s, h), lambda i: (i, 0, 0)),
        compiler_params=pltpu.CompilerParams(
            dimension_semantics=("parallel",),
            vmem_limit_bytes=VMEM_LIMIT),
    )(word, pos, tok, gamma.reshape(1, h), beta.reshape(1, h))


def linear(x, w, b, activation="none", tile_n=None, tile_m=None):
    """y = act(x @ w + b), tiled over M (rows) and N (weight columns).

    Grid order is (N, M): the weight tile index depends only on the outer N
    axis, so it stays resident in VMEM while activation M-tiles stream.
    Both axes are "parallel" (no reduction axis is tiled) for megacore.
    """
    m, k = x.shape
    n = w.shape[1]
    tile_n = _pick_tile(n, tile_n or n)
    tile_m = _pick_tile(m, tile_m or TILE_M)
    kern = functools.partial(_linear_kernel, activation=activation)
    return pl.pallas_call(
        kern,
        out_shape=jax.ShapeDtypeStruct((m, n), jnp.bfloat16),
        grid=(n // tile_n, m // tile_m),
        in_specs=[
            pl.BlockSpec((tile_m, k), lambda j, i: (i, 0)),   # streamed rows
            pl.BlockSpec((k, tile_n), lambda j, i: (0, j)),   # resident weight
            pl.BlockSpec((1, tile_n), lambda j, i: (0, j)),   # resident bias
        ],
        out_specs=pl.BlockSpec((tile_m, tile_n), lambda j, i: (i, j)),
        compiler_params=pltpu.CompilerParams(
            dimension_semantics=("parallel", "parallel"),
            vmem_limit_bytes=VMEM_LIMIT),
    )(x, w, b.reshape(1, n))


def linear_residual_layernorm(x, w, b, res, gamma, beta, tile_m=None):
    """LayerNorm(x @ w + b + res) fused; M-tiled, weight resident across M."""
    m, k = x.shape
    h = w.shape[1]
    tile_m = _pick_tile(m, tile_m or TILE_M)
    return pl.pallas_call(
        _linear_residual_ln_kernel,
        out_shape=jax.ShapeDtypeStruct((m, h), jnp.bfloat16),
        grid=(m // tile_m,),
        in_specs=[
            pl.BlockSpec((tile_m, k), lambda i: (i, 0)),
            pl.BlockSpec((k, h), lambda i: (0, 0)),           # resident weight
            pl.BlockSpec((1, h), lambda i: (0, 0)),
            pl.BlockSpec((tile_m, h), lambda i: (i, 0)),
            pl.BlockSpec((1, h), lambda i: (0, 0)),
            pl.BlockSpec((1, h), lambda i: (0, 0)),
        ],
        out_specs=pl.BlockSpec((tile_m, h), lambda i: (i, 0)),
        compiler_params=pltpu.CompilerParams(
            dimension_semantics=("parallel",),
            vmem_limit_bytes=VMEM_LIMIT),
    )(x, w, b.reshape(1, h), res, gamma.reshape(1, h), beta.reshape(1, h))


def multi_head_attention(qkv, add_mask, batch, seq, num_heads):
    """qkv: (B*S, 3H) fused projection (bf16); add_mask: (B, 1, S) additive f32.

    Head split/merge happens in-kernel: the input is a reshape-only
    (B, S, 3H) view, the output is written directly in merged (B, S, H)
    layout (lane-dense 768-wide stores). No HBM transposes either side.
    """
    hidden = qkv.shape[1] // 3
    dh = hidden // num_heads
    qkv3 = qkv.reshape(batch, seq, 3 * hidden)    # reshape only, no transpose

    out = pl.pallas_call(
        functools.partial(_attention_kernel, num_heads=num_heads,
                          scale=1.0 / (dh ** 0.5)),
        out_shape=jax.ShapeDtypeStruct((batch, seq, hidden), jnp.bfloat16),
        grid=(batch,),
        in_specs=[
            pl.BlockSpec((1, seq, 3 * hidden), lambda b: (b, 0, 0)),
            pl.BlockSpec((1, 1, seq), lambda b: (b, 0, 0)),
        ],
        out_specs=pl.BlockSpec((1, seq, hidden), lambda b: (b, 0, 0)),
        compiler_params=pltpu.CompilerParams(
            dimension_semantics=("parallel",),
            vmem_limit_bytes=VMEM_LIMIT),
    )(qkv3, add_mask)

    return out.reshape(batch * seq, hidden)


def pooler_classifier(cls_tok, wp, bp, wo, bo, labels):
    b, h = cls_tok.shape
    n_pad = max(128, ((labels + 127) // 128) * 128)   # lane-dense logits slab
    wo_p = jnp.zeros((h, n_pad), wo.dtype).at[:, :labels].set(wo)
    bo_p = jnp.zeros((1, n_pad), jnp.float32).at[0, :labels].set(bo)
    logits = pl.pallas_call(
        _pooler_classifier_kernel,
        out_shape=jax.ShapeDtypeStruct((b, n_pad), jnp.float32),
        in_specs=[_VMEM] * 5,
        out_specs=_VMEM,
        compiler_params=pltpu.CompilerParams(vmem_limit_bytes=VMEM_LIMIT),
    )(cls_tok, wp, bp.reshape(1, h), wo_p, bo_p)
    return logits[:, :labels]


# ----------------------------- model -----------------------------

CFG = dict(vocab=100, max_pos=64, type_vocab=2, hidden=768, heads=12,
           layers=2, inter=3072, labels=3)


def init_params(key, cfg):
    H, I = cfg["hidden"], cfg["inter"]
    std = 0.02
    keys = iter(jax.random.split(key, 64))

    def nrm(shape, dtype=jnp.bfloat16):
        return (std * jax.random.normal(next(keys), shape)).astype(dtype)

    params = {
        "word_emb": nrm((cfg["vocab"], H)),
        "pos_emb": nrm((cfg["max_pos"], H)),
        "type_emb": nrm((cfg["type_vocab"], H)),
        "emb_ln_g": jnp.ones((H,), jnp.float32),
        "emb_ln_b": jnp.zeros((H,), jnp.float32),
        "pool_w": nrm((H, H)),
        "pool_b": jnp.zeros((H,), jnp.float32),
        "out_w": nrm((H, cfg["labels"])),
        "out_b": jnp.zeros((cfg["labels"],), jnp.float32),
        "layers": [],
    }
    for _ in range(cfg["layers"]):
        params["layers"].append({
            # fused QKV projection: [wq | wk | wv] -> (H, 3H)
            "w_qkv": nrm((H, 3 * H)),
            "b_qkv": jnp.zeros((3 * H,), jnp.float32),
            "wo": nrm((H, H)), "bo": jnp.zeros((H,), jnp.float32),
            "ln1_g": jnp.ones((H,), jnp.float32),
            "ln1_b": jnp.zeros((H,), jnp.float32),
            "w1": nrm((H, I)), "b1": jnp.zeros((I,), jnp.float32),
            "w2": nrm((I, H)), "b2": jnp.zeros((H,), jnp.float32),
            "ln2_g": jnp.ones((H,), jnp.float32),
            "ln2_b": jnp.zeros((H,), jnp.float32),
        })
    return params


def scibert_forward(params, ids, mask, token_type_ids, cfg):
    B, S = ids.shape
    H = cfg["hidden"]

    # ---- embeddings: gathers are glue; add + LayerNorm fused in one kernel ----
    word = params["word_emb"][ids]                        # (B, S, H) bf16
    pos = params["pos_emb"][:S][None, :, :]               # (1, S, H)
    tok = params["type_emb"][token_type_ids]              # (B, S, H)
    h = embed_layernorm(word, pos, tok,
                        params["emb_ln_g"], params["emb_ln_b"])
    h = h.reshape(B * S, H)                               # bf16

    add_mask = ((1.0 - mask.astype(jnp.float32)) * -10000.0).reshape(B, 1, S)

    # ---- encoder layers ----
    for lp in params["layers"]:
        # fused QKV projection, weight tiled over N=3H, rows tiled over M
        qkv = linear(h, lp["w_qkv"], lp["b_qkv"], tile_n=H)        # (B*S, 3H)
        ctx = multi_head_attention(qkv, add_mask, B, S, cfg["heads"])
        # output projection + residual + LayerNorm fused
        h = linear_residual_layernorm(ctx, lp["wo"], lp["bo"], h,
                                      lp["ln1_g"], lp["ln1_b"])
        # FFN up-projection + GELU
        ffn = linear(h, lp["w1"], lp["b1"], activation="gelu", tile_n=H)
        # FFN down-projection + residual + LayerNorm fused
        h = linear_residual_layernorm(ffn, lp["w2"], lp["b2"], h,
                                      lp["ln2_g"], lp["ln2_b"])

    # ---- pooler (tanh Linear on CLS) + dropout(identity) + classifier ----
    cls = h.reshape(B, S, H)[:, 0, :]                     # (B, H)
    logits = pooler_classifier(cls, params["pool_w"], params["pool_b"],
                               params["out_w"], params["out_b"],
                               cfg["labels"])
    return logits


# ----------------------------- main -----------------------------

if __name__ == "__main__":
    key = jax.random.PRNGKey(0)
    k_param, k_ids, k_mask = jax.random.split(key, 3)

    B, S = 2, 8
    params = init_params(k_param, CFG)

    ids = jax.random.randint(k_ids, (B, S), 0, CFG["vocab"], dtype=jnp.int32)
    mask = jnp.ones((B, S), dtype=jnp.int32).at[:, -2:].set(0)  # pad last 2
    token_type_ids = jnp.zeros((B, S), dtype=jnp.int32)

    logits = scibert_forward(params, ids, mask, token_type_ids, CFG)
    logits = jax.block_until_ready(logits)
    assert logits.shape == (B, CFG["labels"])
    assert bool(jnp.all(jnp.isfinite(logits)))
    print("KERNEL_OK")
</pallas_src>

<mosaic_0001>
module attributes {stable_mosaic.version = 11 : i64} {
  func.func @_embed_ln_kernel(%arg0: i32, %arg1: memref<1x8x768xbf16, #tpu.memory_space<vmem>>, %arg2: memref<1x8x768xbf16, #tpu.memory_space<vmem>>, %arg3: memref<1x8x768xbf16, #tpu.memory_space<vmem>>, %arg4: memref<1x768xf32, #tpu.memory_space<vmem>>, %arg5: memref<1x768xf32, #tpu.memory_space<vmem>>, %arg6: memref<1x8x768xbf16, #tpu.memory_space<vmem>>) attributes {dimension_semantics = [#tpu.dimension_semantics<parallel>], iteration_bounds = array<i64: 2>, scalar_prefetch = 0 : i64, scratch_operands = 0 : i64, tpu.core_type = #tpu.core_type<tc>, window_params = [{transform_indices = @transform_0, window_bounds = array<i64: 1, 8, 768>}, {pipeline_mode = #tpu.pipeline_mode<synchronous>, transform_indices = @transform_1, window_bounds = array<i64: 1, 8, 768>}, {transform_indices = @transform_2, window_bounds = array<i64: 1, 8, 768>}, {pipeline_mode = #tpu.pipeline_mode<synchronous>, transform_indices = @transform_3, window_bounds = array<i64: 1, 768>}, {pipeline_mode = #tpu.pipeline_mode<synchronous>, transform_indices = @transform_4, window_bounds = array<i64: 1, 768>}, {transform_indices = @transform_5, window_bounds = array<i64: 1, 8, 768>}]} {
    %c0 = arith.constant 0 : index
    %c0_0 = arith.constant 0 : index
    %c0_1 = arith.constant 0 : index
    %0 = vector.load %arg1[%c0, %c0_0, %c0_1] : memref<1x8x768xbf16, #tpu.memory_space<vmem>>, vector<1x8x768xbf16>
    %1 = arith.extf %0 : vector<1x8x768xbf16> to vector<1x8x768xf32>
    %c0_2 = arith.constant 0 : index
    %c0_3 = arith.constant 0 : index
    %c0_4 = arith.constant 0 : index
    %2 = vector.load %arg2[%c0_2, %c0_3, %c0_4] : memref<1x8x768xbf16, #tpu.memory_space<vmem>>, vector<1x8x768xbf16>
    %3 = arith.extf %2 : vector<1x8x768xbf16> to vector<1x8x768xf32>
    %4 = arith.addf %1, %3 : vector<1x8x768xf32>
    %c0_5 = arith.constant 0 : index
    %c0_6 = arith.constant 0 : index
    %c0_7 = arith.constant 0 : index
    %5 = vector.load %arg3[%c0_5, %c0_6, %c0_7] : memref<1x8x768xbf16, #tpu.memory_space<vmem>>, vector<1x8x768xbf16>
    %6 = arith.extf %5 : vector<1x8x768xbf16> to vector<1x8x768xf32>
    %7 = arith.addf %4, %6 : vector<1x8x768xf32>
    %cst = arith.constant dense<0.000000e+00> : vector<1x8xf32>
    %8 = vector.multi_reduction <add>, %7, %cst [2] : vector<1x8x768xf32> to vector<1x8xf32>
    %9 = vector.shape_cast %8 : vector<1x8xf32> to vector<1x8x1xf32>
    %cst_8 = arith.constant 7.680000e+02 : f32
    %10 = vector.broadcast %cst_8 : f32 to vector<1x8x1xf32>
    %11 = arith.divf %9, %10 : vector<1x8x1xf32>
    %12 = vector.broadcast %11 : vector<1x8x1xf32> to vector<1x8x768xf32>
    %13 = arith.subf %7, %12 : vector<1x8x768xf32>
    %14 = arith.mulf %13, %13 : vector<1x8x768xf32>
    %cst_9 = arith.constant dense<0.000000e+00> : vector<1x8xf32>
    %15 = vector.multi_reduction <add>, %14, %cst_9 [2] : vector<1x8x768xf32> to vector<1x8xf32>
    %16 = vector.shape_cast %15 : vector<1x8xf32> to vector<1x8x1xf32>
    %cst_10 = arith.constant 7.680000e+02 : f32
    %17 = vector.broadcast %cst_10 : f32 to vector<1x8x1xf32>
    %18 = arith.divf %16, %17 : vector<1x8x1xf32>
    %19 = vector.broadcast %11 : vector<1x8x1xf32> to vector<1x8x768xf32>
    %20 = arith.subf %7, %19 : vector<1x8x768xf32>
    %cst_11 = arith.constant 9.99999996E-13 : f32
    %21 = vector.broadcast %cst_11 : f32 to vector<1x8x1xf32>
    %22 = arith.addf %18, %21 : vector<1x8x1xf32>
    %23 = math.rsqrt %22 : vector<1x8x1xf32>
    %24 = vector.broadcast %23 : vector<1x8x1xf32> to vector<1x8x768xf32>
    %25 = arith.mulf %20, %24 : vector<1x8x768xf32>
    %c0_12 = arith.constant 0 : index
    %c0_13 = arith.constant 0 : index
    %26 = vector.load %arg4[%c0_12, %c0_13] : memref<1x768xf32, #tpu.memory_space<vmem>>, vector<1x768xf32>
    %27 = vector.shape_cast %26 : vector<1x768xf32> to vector<1x1x768xf32>
    %28 = vector.broadcast %27 : vector<1x1x768xf32> to vector<1x8x768xf32>
    %29 = arith.mulf %25, %28 : vector<1x8x768xf32>
    %c0_14 = arith.constant 0 : index
    %c0_15 = arith.constant 0 : index
    %30 = vector.load %arg5[%c0_14, %c0_15] : memref<1x768xf32, #tpu.memory_space<vmem>>, vector<1x768xf32>
    %31 = vector.shape_cast %30 : vector<1x768xf32> to vector<1x1x768xf32>
    %32 = vector.broadcast %31 : vector<1x1x768xf32> to vector<1x8x768xf32>
    %33 = arith.addf %29, %32 : vector<1x8x768xf32>
    %34 = arith.truncf %33 : vector<1x8x768xf32> to vector<1x8x768xbf16>
    %c0_16 = arith.constant 0 : index
    %c0_17 = arith.constant 0 : index
    %c0_18 = arith.constant 0 : index
    %35 = vector.load %arg6[%c0_16, %c0_17, %c0_18] : memref<1x8x768xbf16, #tpu.memory_space<vmem>>, vector<1x8x768xbf16>
    tpu.vector_store %arg6[%c0_16, %c0_17, %c0_18], %34 {strides = array<i32>} : memref<1x8x768xbf16, #tpu.memory_space<vmem>>, vector<1x8x768xbf16>,
    return
  }
  func.func @transform_0(%arg0: i32) -> (i32, i32, i32) {
    %c0_i32 = arith.constant 0 : i32
    %c0_i32_0 = arith.constant 0 : i32
    %c0_i32_1 = arith.constant 0 : i32
    return %arg0, %c0_i32, %c0_i32_0 : i32, i32, i32
  }
  func.func @transform_1(%arg0: i32) -> (i32, i32, i32) {
    %c0_i32 = arith.constant 0 : i32
    %c0_i32_0 = arith.constant 0 : i32
    %c0_i32_1 = arith.constant 0 : i32
    %c0_i32_2 = arith.constant 0 : i32
    return %c0_i32, %c0_i32_0, %c0_i32_1 : i32, i32, i32
  }
  func.func @transform_2(%arg0: i32) -> (i32, i32, i32) {
    %c0_i32 = arith.constant 0 : i32
    %c0_i32_0 = arith.constant 0 : i32
    %c0_i32_1 = arith.constant 0 : i32
    return %arg0, %c0_i32, %c0_i32_0 : i32, i32, i32
  }
  func.func @transform_3(%arg0: i32) -> (i32, i32) {
    %c0_i32 = arith.constant 0 : i32
    %c0_i32_0 = arith.constant 0 : i32
    %c0_i32_1 = arith.constant 0 : i32
    return %c0_i32, %c0_i32_0 : i32, i32
  }
  func.func @transform_4(%arg0: i32) -> (i32, i32) {
    %c0_i32 = arith.constant 0 : i32
    %c0_i32_0 = arith.constant 0 : i32
    %c0_i32_1 = arith.constant 0 : i32
    return %c0_i32, %c0_i32_0 : i32, i32
  }
  func.func @transform_5(%arg0: i32) -> (i32, i32, i32) {
    %c0_i32 = arith.constant 0 : i32
    %c0_i32_0 = arith.constant 0 : i32
    %c0_i32_1 = arith.constant 0 : i32
    return %arg0, %c0_i32, %c0_i32_0 : i32, i32, i32
  }
}

</mosaic_0001>

<bundles_post_ra>
// kernel: tpu_custom_call.1
= control target key start
LH: loop header
LB: loop body
LE: loop exit
PB: predicated region body
PF: predicated region fallthrough
CT: control target
= control target key end

     0   :  { %s1174_s0 = inlined_call_operand.hbm [shape: bf16[2,8,768], index: 0, kind: input, shape index: {}]   ;;  %s1175_s1 = inlined_call_operand.hbm [shape: bf16[1,8,768], index: 1, kind: input, shape index: {}]   ;;  %s1176_s2 = inlined_call_operand.hbm [shape: bf16[2,8,768], index: 2, kind: input, shape index: {}]   ;;  %s1177_s3 = inlined_call_operand.hbm [shape: f32[1,768], index: 3, kind: input, shape index: {}]   ;;  %s1178_s4 = inlined_call_operand.hbm [shape: f32[1,768], index: 4, kind: input, shape index: {}]   ;;  %s1179_s5 = inlined_call_operand.hbm [shape: bf16[2,8,768], index: 5, kind: output, shape index: {}]  }
   0x1   :  { %1182 = sst [smem:[#allocation20_spill]] %s1174_s0 }
   0x2   :  { %1183 = sst [smem:[#allocation21_spill]] %s1175_s1 }
   0x3   :  { %10 = vsyncpa [#allocation3], 0 }
   0x4   :  { %12 = vsyncpa [#allocation3 + $0x1], 0 }
   0x5   :  { %13 = vsyncpa [#allocation6], 0 }
   0x6   :  { %14 = vsyncpa [#allocation10], 0 }
   0x7   :  { %15 = vsyncpa [#allocation4], 0 }
   0x8   :  { %17 = vsyncpa [#allocation4 + $0x1], 0  ;;  %s973_s18 = smov 0   ;;  %s975_s19 = smov 0  }
   0x9   :  { %s977_s20 = smov 0   ;;  %s979_s21 = smov 0  }
   0xa LB: > { %1184 = sst [smem:[#allocation18_spill]] %s933_s20  ;;  %s994_s22 = sadd.s32 4294967295, %s937_s21   ;;  %s937_s21 = sphi %s979_s21, %s1205_s21   ;;  %s933_s20 = sphi %s977_s20, %s1202_s20   ;;  %s929_s19 = sphi %s975_s19, %s1204_s19   ;;  %s925_s18 = sphi %s973_s18, %s1203_s18  }
   0xb   : > { %s597_s23 = sadd.s32 4294967294, %s937_s21   ;;  %p43_p0 = scmp.ne.s32.totalorder %s929_s19, %s925_s18 }
   0xc   : > { %p1181_p1 = scmp.eq.s32.totalorder %s994_s22, 0  ;;  %p156_p2 = scmp.eq.s32.totalorder %s994_s22, 1 }
   0xd   : > { %p162_p3 = scmp.eq.s32.totalorder %s597_s23, 1  ;;  %p598_p5 = scmp.ge.s32.totalorder %s937_s21, 1 }
   0xe   : > { %p1003_p4 = por %p1181_p1, %p43_p0  ;;  %p169_p7 = scmp.lt.s32.totalorder %s937_s21, 3 }
   0xf   : > { %p1008_p6 = por %p162_p3, %p43_p0  ;;  %s1187_s1 = sld [smem:[#allocation21_spill]] }
  0x10   : > { %p1016_p8 = pnand %p598_p5, %p169_p7  ;;  %s939_s30 = smov [#allocation5]  }
  0x11   : > { %s183_s6 = sshll.u32 %s939_s30, 4  ;;  %s1030_s8 = sadd.s32 1, %s937_s21   ;;  %s184_s6 = int_to_ptr.vmem [resolvable:$true] %s183_s6 }
  0x12   : > { %p636_p10 = pneg %p1016_p8  ;;  %s30_s9 = sadd.s32 1, %s933_s20 }
  0x13   : > { %s27_s10 = ssub.s32 %s937_s21, %s1030_s8  ;;  %p37_p13 = scmp.ne.s32.totalorder %s933_s20, %s929_s19 }
  0x14   : > { %p1025_p11 = pnand %p636_p10, %p1181_p1  ;;  %p28_p12 = scmp.eq.s32.totalorder %s27_s10, 0 }
  0x15   : > { %s181_s28 = sshll.u32 %s1187_s1, 4  ;;  %p38_p0 = scmp.eq.s32.totalorder %s937_s21, 0  ;;  %s182_s28 = int_to_ptr.hbm [resolvable:$true] %s181_s28 }
  0x16   : > { %639 = dma.hbm_to_vmem [thread:$0]  (!%p1025_p11), %s182_s28, 384, %s184_s6, [#allocation6]  }
  0x17   : > { %p660_p3 = scmp.lt.s32.totalorder %s937_s21, 2  ;;  %p39_p5 = por %p38_p0, %p37_p13 }
  0x18   : > { %s1042_s11 = scalar_select %p28_p12, %s933_s20, %s30_s9  }
  0x19   : > { %p1046_p7 = por %p156_p2, %p37_p13  ;;  %s218_s13 = sand.u32 1, %s937_s21  }
  0x1a   : > { %1190 = sst [smem:[#allocation19_spill]] %s1042_s11  ;;  %s220_s14 = sand.u32 1, %s933_s20  }
  0x1b   : > { %s1052_s15 = smul.u32 24, %s220_s14  ;;  %p1055_p10 = pnand %p660_p3, %p39_p5 }
  0x1c   : > { %s613_s16 = smul.u32 24, %s937_s21  ;;  %s193_s27 = sshll.u32 %s1177_s3, 4  ;;  %s194_s27 = int_to_ptr.hbm [resolvable:$true] %s193_s27 }
  0x1d   : > { %s1193_s0 = sld [smem:[#allocation20_spill]]  ;;  %s222_s9 = scalar_lea.vmem [#allocation2], %s1052_s15 }
  0x1e   : > { %s231_s10 = sshll.u32 %s222_s9, 4  ;;  %s1068_s1 = scalar_lea.sflag [#allocation3], %s218_s13  ;;  %s232_s10 = int_to_ptr.vmem [resolvable:$true] %s231_s10 }
  0x1f   : > { %p739_p12 = pneg %p1055_p10 }
  0x23   : > { %s227_s6 = scalar_lea.hbm %s1193_s0, %s613_s16  ;;  %s742_s28 = scalar_lea.hbm %s1193_s0, 48 }
  0x24   : > { %s229_s14 = sshll.u32 %s227_s6, 4  ;;  %s230_s14 = int_to_ptr.hbm [resolvable:$true] %s229_s14 }
  0x25   : > { %s735_s11 = sshra.s32 %s230_s14, 4  ;;  %s736_s11 = int_to_ptr.hbm [resolvable:$true] %s735_s11 }
  0x26   : > { %s737_s20 = scalar_lea.hbm %s736_s11, 24  ;;  %p743_p3 = scmp.lt.s32.totalorder %s736_s11, %s1193_s0 }
  0x27   : > { %p738_p2 = scmp.ne.s32.totalorder %s736_s11, %s737_s20  ;;  %p744_p5 = scmp.lt.s32.totalorder %s742_s28, %s737_s20 }
  0x29   : > { %p740_p13 = pnand %p739_p12, %p738_p2  ;;  %p745_p9 = por %p744_p5, %p743_p3 }
  0x2b   : > { %p741_p0 = pneg %p740_p13 }
  0x2d   : > { %p746_p1 = pnand %p745_p9, %p741_p0 }
  0x2f   : > { %749 = shalt.err (!%p746_p1)
}
  0x30   : > { %649 = dma.hbm_to_vmem [thread:$0]  (!%p1055_p10), %s230_s14, 384, %s232_s10, %s1068_s1  }
  0x31   : > { %s940_s13 = smov [#allocation8]   ;;  %s205_s30 = sshll.u32 %s1178_s4, 4  ;;  %s206_s30 = int_to_ptr.hbm [resolvable:$true] %s205_s30 }
  0x32   : > { %s195_s9 = sshll.u32 %s940_s13, 4  ;;  %s941_s20 = smov [#allocation9]   ;;  %s196_s9 = int_to_ptr.vmem [resolvable:$true] %s195_s9 }
  0x33   : > { %642 = dma.hbm_to_vmem [thread:$0]  (!%p1025_p11), %s194_s27, 96, %s196_s9, [#allocation6]  }
  0x34   : > { %s207_s11 = sshll.u32 %s941_s20, 4  ;;  %s247_s0 = scalar_lea.hbm %s1176_s2, %s613_s16  ;;  %s208_s11 = int_to_ptr.vmem [resolvable:$true] %s207_s11 }
  0x35   : > { %s249_s10 = sshll.u32 %s247_s0, 4  ;;  %s242_s14 = scalar_lea.vmem [#allocation7], %s1052_s15  ;;  %s250_s10 = int_to_ptr.hbm [resolvable:$true] %s249_s10 }
  0x36   : > { %645 = dma.hbm_to_vmem [thread:$0]  (!%p1025_p11), %s206_s30, 96, %s208_s11, [#allocation10]  }
  0x37   : > { %s251_s13 = sshll.u32 %s242_s14, 4  ;;  %s825_s23 = sshra.s32 %s250_s10, 4  ;;  %s252_s13 = int_to_ptr.vmem [resolvable:$true] %s251_s13  ;;  %s826_s23 = int_to_ptr.hbm [resolvable:$true] %s825_s23 }
  0x38   : > { %s827_s26 = scalar_lea.hbm %s826_s23, 24  ;;  %s832_s16 = scalar_lea.hbm %s1176_s2, 48 }
  0x39   : > { %p828_p1 = scmp.ne.s32.totalorder %s826_s23, %s827_s26  ;;  %p833_p11 = scmp.lt.s32.totalorder %s826_s23, %s1176_s2 }
  0x3a   : > { %p834_p13 = scmp.lt.s32.totalorder %s832_s16, %s827_s26 }
  0x3b   : > { %p830_p9 = pnand %p828_p1, %p739_p12 }
  0x3c   : > { %p835_p0 = por %p834_p13, %p833_p11 }
  0x3d   : > { %p831_p2 = pneg %p830_p9 }
  0x3f   : > { %p836_p3 = pnand %p835_p0, %p831_p2 }
  0x41   : > { %839 = shalt.err (!%p836_p3)
}
  0x42   : > { %652 = dma.hbm_to_vmem [thread:$0]  (!%p1055_p10), %s250_s10, 384, %s252_s13, %s1068_s1  }
  0x43   : > { %260 = sbr.rel (%p1016_p8) target bundleno = 386 (0x182), region = 40  ;;  %s262_s7 = sand.u32 (!%p1016_p8), 1, %s994_s22  }
  0x44   : > { %s264_s15 = sand.u32 (!%p1016_p8), 1, %s929_s19   ;;  %s263_s11 = scalar_lea.sflag (!%p1016_p8), [#allocation3], %s262_s7 }
  0x45   : > { %s1115_s30 = smul.u32 (!%p1016_p8), 24, %s264_s15 }
  0x47   : > { %s266_s28 = scalar_lea.vmem (!%p1016_p8), [#allocation2], %s1115_s30 }
  0x48   : > { %900 = dma.done.wait (%p1003_p4), %s263_s11, 384  }
  0x49   : > { %902 = vsyncadd (%p1003_p4), %s263_s11, 4294966912  ;;  %p1194_p10 = scmp.eq.s32.totalorder %s994_s22, 0 }
  0x4b   : > { %904 = dma.done.wait (%p1194_p10), [#allocation6], 384   ;;  %p1195_p8 = pmov %p1194_p10 }
  0x4c   : > { %s281_s1 = scalar_lea.vmem [#allocation7], %s1115_s30 }
  0x4d   : > { %906 = vsyncadd (%p1195_p8), [#allocation6], 4294966912 }
  0x4e   : > { %908 = dma.done.wait (%p1003_p4), %s263_s11, 384  }
  0x4f   : > { %910 = vsyncadd (%p1003_p4), %s263_s11, 4294966912  ;;  %p1196_p12 = pmov %p1195_p8 }
  0x50   : > { %p1197_p5 = pmov %p1195_p8 }
  0x51   : > { %912 = dma.done.wait (%p1196_p12), [#allocation6], 96  }
  0x52   : > { %914 = vsyncadd (%p1197_p5), [#allocation6], 4294967200  ;;  %p1198_p1 = pmov %p1197_p5 }
  0x54   : > { %916 = dma.done.wait (%p1198_p1), [#allocation10], 96   ;;  %p1199_p9 = pmov %p1198_p1 }
  0x55   : > { %v324_v0 = vld [vmem:[%s266_s28] sm:$0xff]  ;;  %v325_v1 = vld [vmem:[%s266_s28 + $0x8] sm:$0xff]  ;;  %v326_v2 = vld [vmem:[%s266_s28 + $0x10] sm:$0xff]  ;;  %v942_v44 = vmov 768.0   ;;  %s617_s24 = smul.u32 24, %s994_s22  ;;  %s323_s6 = scalar_lea.vmem [#allocation11], %s1115_s30 }
  0x56   : > { %918 = vsyncadd (%p1199_p9), [#allocation10], 4294967200  ;;  %v327_v3 = vunpack.c.l.bf16 %v324_v0  ;;  %v328_v4 = vunpack.c.h.bf16 %v324_v0  ;;  %v329_v5 = vunpack.c.l.bf16 %v325_v1  ;;  %v330_v6 = vunpack.c.h.bf16 %v325_v1  ;;  %v333_v7 = vld [vmem:[#allocation5] sm:$0xff]  ;;  %v334_v8 = vld [vmem:[#allocation5 + $0x8] sm:$0xff]  ;;  %s475_s10 = sshll.u32 %s323_s6, 4  ;;  %s462_s13 = scalar_lea.sflag [#allocation4], %s264_s15  ;;  %s476_s10 = int_to_ptr.vmem [resolvable:$true] %s475_s10 }
  0x57   : > { %v335_v9 = vld [vmem:[#allocation5 + $0x10] sm:$0xff]  ;;  %v336_v10 = vunpack.c.l.bf16 %v333_v7  ;;  %v337_v11 = vunpack.c.h.bf16 %v333_v7  ;;  %v331_v13 = vunpack.c.l.bf16 %v326_v2  ;;  %v338_v14 = vunpack.c.l.bf16 %v334_v8  ;;  %v349_v17 = vld [vmem:[%s281_s1 + $0x8] sm:$0xff]  ;;  %v350_v20 = vld [vmem:[%s281_s1 + $0x10] sm:$0xff]  ;;  %s473_s22 = scalar_lea.hbm %s1179_s5, %s617_s24  ;;  %s875_s16 = scalar_lea.hbm %s1179_s5, 48 }
  0x58   : > { %v348_v12 = vld [vmem:[%s281_s1] sm:$0xff]  ;;  %v339_v15 = vunpack.c.h.bf16 %v334_v8  ;;  %v340_v16 = vunpack.c.l.bf16 %v335_v9  ;;  %v332_v23 = vunpack.c.h.bf16 %v326_v2  ;;  %v341_v24 = vunpack.c.h.bf16 %v335_v9  ;;  %s477_s14 = sshll.u32 %s473_s22, 4  ;;  %s478_s14 = int_to_ptr.hbm [resolvable:$true] %s477_s14 }
  0x59   : > { %v342_v18 = vadd.f32 %v336_v10, %v327_v3  ;;  %v343_v19 = vadd.f32 %v337_v11, %v328_v4  ;;  %v351_v21 = vunpack.c.l.bf16 %v348_v12  ;;  %v352_v22 = vunpack.c.h.bf16 %v348_v12  ;;  %v415_v12 = vld [vmem:[#allocation8] sm:$0x3f]  ;;  %s869_s23 = sshra.s32 %s478_s14, 4  ;;  %s870_s23 = int_to_ptr.hbm [resolvable:$true] %s869_s23 }
  0x5a   : > { %v344_v25 = vadd.f32 %v338_v14, %v329_v5  ;;  %v345_v26 = vadd.f32 %v339_v15, %v330_v6  ;;  %v353_v27 = vunpack.c.l.bf16 %v349_v17  ;;  %v354_v28 = vunpack.c.h.bf16 %v349_v17  ;;  %v435_v15 = vld [vmem:[#allocation9] sm:$0x3f]  ;;  %s871_s26 = scalar_lea.hbm %s870_s23, 24  ;;  %p876_p13 = scmp.lt.s32.totalorder %s870_s23, %s1179_s5 }
  0x5b   : > { %v346_v29 = vadd.f32 %v340_v16, %v331_v13  ;;  %v355_v30 = vunpack.c.l.bf16 %v350_v20  ;;  %v357_v31 = vadd.f32 %v351_v21, %v342_v18  ;;  %v358_v32 = vadd.f32 %v352_v22, %v343_v19  ;;  %p872_p4 = scmp.ne.s32.totalorder %s870_s23, %s871_s26  ;;  %p877_p0 = scmp.lt.s32.totalorder %s875_s16, %s871_s26 }
  0x5c   : > { %v359_v33 = vadd.f32 %v353_v27, %v344_v25  ;;  %v347_v34 = vadd.f32 %v341_v24, %v332_v23  ;;  %v356_v35 = vunpack.c.h.bf16 %v350_v20  ;;  %v360_v36 = vadd.f32 %v354_v28, %v345_v26 }
  0x5d   : > { %v363_v37 = vadd.f32 %v358_v32, %v357_v31  ;;  %v361_v38 = vadd.f32 %v355_v30, %v346_v29  ;;  %701 = vrcp.f32 %v942_v44  ;;  %v417_v16 = vperm.slane %v415_v12, 0  ;;  %p873_p2 = pnand %p872_p4, %p1046_p7  ;;  %p878_p3 = por %p877_p0, %p876_p13 }
  0x5e   : > { %v362_v40 = vadd.f32 %v356_v35, %v347_v34  ;;  %v418_v17 = vperm.slane %v415_v12, 1  ;;  %v419_v18 = vperm.slane %v415_v12, 2  ;;  %v420_v20 = vperm.slane %v415_v12, 3 }
  0x5f   : > { %v364_v39 = vadd.f32 %v363_v37, %v359_v33  ;;  %v421_v21 = vperm.slane %v415_v12, 4  ;;  %v422_v22 = vperm.slane %v415_v12, 5  ;;  %v437_v23 = vperm.slane %v435_v15, 0  ;;  %p874_p11 = pneg %p873_p2 }
  0x60   : > { %v438_v25 = vperm.slane %v435_v15, 1  ;;  %v439_v26 = vperm.slane %v435_v15, 2  ;;  %v440_v27 = vperm.slane %v435_v15, 3  ;;  %v441_v34 = vperm.slane %v435_v15, 4 }
  0x61   : > { %v365_v41 = vadd.f32 %v364_v39, %v360_v36  ;;  %v442_v35 = vperm.slane %v435_v15, 5  ;;  %p879_p10 = pnand %p878_p3, %p874_p11 }
  0x63   : > { %v366_v42 = vadd.f32 %v365_v41, %v361_v38  ;;  %v702_v45 = vpop.eup %701 }
  0x64   : > { %v371_v46 = vmul.f32 768.0, %v702_v45  ;;  %vm375_vm0 = vweird.f32 %v702_v45 }
  0x65   : > { %v367_v43 = vadd.f32 %v366_v42, %v362_v40 }
  0x66   : > { %v372_v47 = vsub.f32 1.0, %v371_v46 }
  0x67   : > { %368 = vadd.xlane.f32.xlu0 %v367_v43 }
  0x68   : > { %v373_v48 = vmul.f32 %v702_v45, %v372_v47 }
  0x6a   : > { %v374_v49 = vadd.f32 %v702_v45, %v373_v48 }
  0x6c   : > { %v376_v50 = vsel %vm375_vm0, %v702_v45, %v374_v49 }
  0xda   : > { %v369_v51 = vpop.xlane.xlu0 %368 }
  0xdb   : > { %v377_v52 = vmul.f32 %v376_v50, %v369_v51 }
  0xdd   : > { %v378_v53 = vsub.f32 %v357_v31, %v377_v52  ;;  %v379_v54 = vsub.f32 %v358_v32, %v377_v52  ;;  %v380_v55 = vsub.f32 %v359_v33, %v377_v52  ;;  %v381_v56 = vsub.f32 %v360_v36, %v377_v52 }
  0xde   : > { %v382_v59 = vsub.f32 %v361_v38, %v377_v52  ;;  %v383_v62 = vsub.f32 %v362_v40, %v377_v52 }
  0xdf   : > { %v384_v57 = vmul.f32 %v378_v53, %v378_v53  ;;  %v385_v58 = vmul.f32 %v379_v54, %v379_v54  ;;  %v386_v60 = vmul.f32 %v380_v55, %v380_v55  ;;  %v387_v63 = vmul.f32 %v381_v56, %v381_v56 }
  0xe0   : > { %v388_v1 = vmul.f32 %v382_v59, %v382_v59  ;;  %v389_v3 = vmul.f32 %v383_v62, %v383_v62 }
  0xe1   : > { %v390_v61 = vadd.f32 %v385_v58, %v384_v57 }
  0xe3   : > { %v391_v0 = vadd.f32 %v390_v61, %v386_v60 }
  0xe5   : > { %v392_v2 = vadd.f32 %v391_v0, %v387_v63 }
  0xe7   : > { %v393_v4 = vadd.f32 %v392_v2, %v388_v1 }
  0xe9   : > { %v394_v5 = vadd.f32 %v393_v4, %v389_v3 }
  0xeb   : > { %395 = vadd.xlane.f32.xlu0 %v394_v5 }
 0x15e   : > { %v396_v6 = vpop.xlane.xlu0 %395 }
 0x15f   : > { %v397_v7 = vmul.f32 %v396_v6, %v376_v50 }
 0x161   : > { %v398_v8 = vadd.f32 1e-12, %v397_v7 }
 0x163   : > { %703 = vrsqrt.f32 %v398_v8  ;;  %vm405_vm2 = vweird.f32 %v398_v8 }
 0x169   : > { %v704_v9 = vpop.eup %703 }
 0x16a   : > { %v400_v10 = vmul.f32 %v704_v9, %v398_v8  ;;  %vm406_vm1 = vweird.f32 %v704_v9 }
 0x16b   : > { %vm407_vm3 = vmor %vm405_vm2, %vm406_vm1 }
 0x16c   : > { %v401_v11 = vmul.f32 %v704_v9, %v400_v10 }
 0x16e   : > { %v402_v13 = vmul.f32 0.5, %v401_v11 }
 0x170   : > { %v403_v14 = vsub.f32 1.5, %v402_v13 }
 0x172   : > { %v404_v19 = vmul.f32 %v704_v9, %v403_v14 }
 0x174   : > { %v408_v24 = vsel %vm407_vm3, %v704_v9, %v404_v19 }
 0x175   : > { %v409_v28 = vmul.f32 %v408_v24, %v378_v53  ;;  %v410_v29 = vmul.f32 %v408_v24, %v379_v54  ;;  %v411_v30 = vmul.f32 %v408_v24, %v380_v55  ;;  %v412_v31 = vmul.f32 %v408_v24, %v381_v56 }
 0x176   : > { %v413_v32 = vmul.f32 %v408_v24, %v382_v59  ;;  %v414_v33 = vmul.f32 %v408_v24, %v383_v62 }
 0x177   : > { %v429_v36 = vmul.f32 %v417_v16, %v409_v28  ;;  %v430_v37 = vmul.f32 %v418_v17, %v410_v29  ;;  %v431_v38 = vmul.f32 %v419_v18, %v411_v30  ;;  %v432_v39 = vmul.f32 %v420_v20, %v412_v31 }
 0x178   : > { %v433_v40 = vmul.f32 %v421_v21, %v413_v32  ;;  %v434_v41 = vmul.f32 %v422_v22, %v414_v33 }
 0x179   : > { %v449_v42 = vadd.f32 %v437_v23, %v429_v36  ;;  %v450_v43 = vadd.f32 %v438_v25, %v430_v37  ;;  %v451_v44 = vadd.f32 %v439_v26, %v431_v38  ;;  %v452_v45 = vadd.f32 %v440_v27, %v432_v39 }
 0x17a   : > { %v453_v46 = vadd.f32 %v441_v34, %v433_v40  ;;  %v454_v47 = vadd.f32 %v442_v35, %v434_v41 }
 0x17b   : > { %v455_v48 = vpack.c.bf16 %v450_v43, %v449_v42  ;;  %v456_v49 = vpack.c.bf16 %v452_v45, %v451_v44 }
 0x17c   : > { %v457_v50 = vpack.c.bf16 %v454_v47, %v453_v46 }
 0x17d   : > { %458 = vst [vmem:[%s323_s6] sm:$0xff] %v455_v48 }
 0x17e   : > { %459 = vst [vmem:[%s323_s6 + $0x8] sm:$0xff] %v456_v49 }
 0x17f   : > { %460 = vst [vmem:[%s323_s6 + $0x10] sm:$0xff] %v457_v50 }
 0x180   : > { %882 = shalt.err (!%p879_p10)
}
 0x181   : > { %634 = dma.vmem_to_hbm [thread:$0]  (%p1046_p7), %s476_s10, 384, %s478_s14, %s462_s13  }
 0x182 PF: > { %s489_s7 = sand.u32 1, %s925_s18   ;;  %p1200_p8 = scmp.ge.s32.totalorder %s937_s21, 2 }
 0x183   : > { %s490_s15 = scalar_lea.sflag [#allocation4], %s489_s7 }
 0x184   : > { %p654_p12 = pnand %p1200_p8, %p1008_p6 }
 0x186   : > { %p655_p5 = pneg %p654_p12 }
 0x188   : > { %920 = dma.done.wait (%p655_p5), %s490_s15, 384  }
 0x189   : > { %922 = vsyncadd (%p655_p5), %s490_s15, 4294966912  ;;  %s1201_s30 = sld [smem:[#allocation18_spill]]  ;;  %p20_p1 = scmp.ge.s32.totalorder %s1030_s8, 4  }
 0x18a   : > { %s1202_s20 = sld [smem:[#allocation19_spill]]  ;;  %s1203_s18 = smov %s929_s19 }
 0x18b   : > { %s1205_s21 = smov %s1030_s8  ;;  %22 = sbr.rel (!%p20_p1) target bundleno = 10 (0xa), region = 108 }
 0x18f   : > { %s1204_s19 = smov %s1201_s30 }
 0x190   :  { %496 = vsyncpa [#allocation3], 1 }
 0x191   :  { %498 = vsyncpa [#allocation3 + $0x1], 1 }
 0x192   :  { %499 = vsyncpa [#allocation6], 1 }
 0x193   :  { %500 = vsyncpa [#allocation10], 1 }
 0x194   :  { %501 = vsyncpa [#allocation4], 1 }
 0x195   :  { %503 = vsyncpa [#allocation4 + $0x1], 1 }

</bundles_post_ra>
